<compile_context>
chip_gen: v7x
topology: tpu7x:2x2x1
jax: 0.10.0
libtpu: 0.0.40
codegen_flags: <defaults>
</compile_context>

<pallas_src>
import functools

import jax
import jax.numpy as jnp
from jax.experimental import pallas as pl
from jax.experimental.pallas import tpu as pltpu


def _round_up(x, m):
    return ((x + m - 1) // m) * m


def _rbm_fwd_kernel_multi_k(v_ref, w_ref, b_ref, o_ref, acc_ref):
    """One (tm, tn) output tile; grid axis 2 runs the K reduction."""
    k = pl.program_id(2)

    @pl.when(k == 0)
    def _init():
        acc_ref[...] = jnp.zeros_like(acc_ref)

    # bf16 x bf16 -> f32 accumulate on the MXU.
    acc_ref[...] += jnp.dot(
        v_ref[...], w_ref[...], preferred_element_type=jnp.float32
    )

    @pl.when(k == pl.num_programs(2) - 1)
    def _finalize():
        z = acc_ref[...] + b_ref[...]          # f32 bias, broadcast over rows
        o_ref[...] = jax.nn.sigmoid(z).astype(o_ref.dtype)


def _rbm_fwd_kernel_single_k(v_ref, w_ref, b_ref, o_ref):
    """Whole K reduction in one MXU pass; fused bias + sigmoid epilogue."""
    z = jnp.dot(v_ref[...], w_ref[...], preferred_element_type=jnp.float32)
    o_ref[...] = jax.nn.sigmoid(z + b_ref[...]).astype(o_ref.dtype)


def _maybe_pad(x, shape, dtype):
    """Cast to dtype and zero-pad up to `shape` (no-op copy avoided if aligned)."""
    x = x.astype(dtype)
    if x.shape == shape:
        return x
    return jnp.zeros(shape, dtype).at[: x.shape[0], : x.shape[1]].set(x)


@functools.partial(jax.jit, static_argnames=("tm", "tn", "tk"))
def rbm_forward(v, W, b, *, tm=256, tn=256, tk=512):
    """p_h = sigmoid(v @ W + b) via a tiled Pallas TPU matmul + fused epilogue."""
    B, n_v = v.shape
    n_v2, n_h = W.shape
    assert n_v == n_v2
    b = b.reshape(1, n_h)

    # Lane/sublane-aligned tile sizes, capped at the (128-aligned) problem size
    # so tiny problems collapse to a single 128x128-tile grid point.  128
    # multiples keep v5e (4x128^2) MXU tiles full; the 256/512 defaults match
    # the v6e/v7x 2x256^2 MXU and stay far under the v7x 64 MiB VMEM budget
    # even with double-buffering.
    tm = min(tm, _round_up(B, 128))
    tn = min(tn, _round_up(n_h, 128))
    tk = min(tk, _round_up(n_v, 128))

    Bp = _round_up(B, tm)
    Np = _round_up(n_h, tn)
    Kp = _round_up(n_v, tk)

    # Zero-pad (only when required) to tile multiples: lane-dense stores, full
    # MXU passes; padded rows/cols contribute zero to the valid output region.
    v_p = _maybe_pad(v, (Bp, Kp), jnp.bfloat16)
    w_p = _maybe_pad(W, (Kp, Np), jnp.bfloat16)
    b_p = _maybe_pad(b, (1, Np), jnp.float32)

    k_steps = Kp // tk

    if k_steps == 1:
        # Single K step: no accumulator scratch, 2-D fully-parallel grid.
        grid_spec = pltpu.PrefetchScalarGridSpec(
            num_scalar_prefetch=0,
            grid=(Bp // tm, Np // tn),
            in_specs=[
                pl.BlockSpec((tm, tk), lambda i, j: (i, 0)),   # v tile (bf16)
                pl.BlockSpec((tk, tn), lambda i, j: (0, j)),   # W tile (bf16)
                pl.BlockSpec((1, tn), lambda i, j: (0, j)),    # bias (f32)
            ],
            out_specs=pl.BlockSpec((tm, tn), lambda i, j: (i, j)),
        )
        kernel = _rbm_fwd_kernel_single_k
        dim_sem = ("parallel", "parallel")
    else:
        grid_spec = pltpu.PrefetchScalarGridSpec(
            num_scalar_prefetch=0,
            grid=(Bp // tm, Np // tn, k_steps),
            in_specs=[
                pl.BlockSpec((tm, tk), lambda i, j, k: (i, k)),   # v tile (bf16)
                pl.BlockSpec((tk, tn), lambda i, j, k: (k, j)),   # W tile (bf16)
                pl.BlockSpec((1, tn), lambda i, j, k: (0, j)),    # bias: const over i, k
            ],
            out_specs=pl.BlockSpec((tm, tn), lambda i, j, k: (i, j)),
            scratch_shapes=[pltpu.VMEM((tm, tn), jnp.float32)],
        )
        kernel = _rbm_fwd_kernel_multi_k
        dim_sem = ("parallel", "parallel", "arbitrary")

    out = pl.pallas_call(
        kernel,
        out_shape=jax.ShapeDtypeStruct((Bp, Np), jnp.float32),
        grid_spec=grid_spec,
        compiler_params=pltpu.CompilerParams(
            dimension_semantics=dim_sem,
            vmem_limit_bytes=32 * 1024 * 1024,
        ),
    )(v_p, w_p, b_p)

    if (Bp, Np) == (B, n_h):
        return out
    return out[:B, :n_h]


if __name__ == "__main__":
    # Small shapes consistent with the module: batch_size=16 (RBM default),
    # n_v=64 visible units, n_h=32 hidden units.
    B, n_v, n_h = 16, 64, 32

    key = jax.random.PRNGKey(0)
    k_w, k_a, k_b, k_v = jax.random.split(key, 4)

    # Deterministic "randn" initialization matching __init__ shapes.
    W = jax.random.normal(k_w, (n_v, n_h), dtype=jnp.float32)
    a = jax.random.normal(k_a, (1, n_v), dtype=jnp.float32)   # unused by forward
    b = jax.random.normal(k_b, (1, n_h), dtype=jnp.float32)

    v = jax.random.normal(k_v, (B, n_v), dtype=jnp.float32)

    p_h = rbm_forward(v, W, b)
    jax.block_until_ready(p_h)

    assert p_h.shape == (B, n_h)
    assert p_h.dtype == jnp.float32

    # f32 reference (loose tolerance: kernel uses bf16 MXU inputs).
    ref_f32 = jax.nn.sigmoid(v @ W + b)
    assert jnp.allclose(p_h, ref_f32, atol=2e-2, rtol=2e-2)

    # bf16-input reference with f32 accumulation (matches kernel precision).
    ref_bf16 = jax.nn.sigmoid(
        jnp.dot(v.astype(jnp.bfloat16), W.astype(jnp.bfloat16),
                preferred_element_type=jnp.float32) + b)
    assert jnp.allclose(p_h, ref_bf16, atol=1e-3, rtol=1e-3)

    # Exercise the multi-K path as well (larger visible layer).
    B2, n_v2, n_h2 = 64, 1024, 256
    k_w2, k_v2, k_b2 = jax.random.split(jax.random.PRNGKey(1), 3)
    W2 = jax.random.normal(k_w2, (n_v2, n_h2), dtype=jnp.float32)
    b2 = jax.random.normal(k_b2, (1, n_h2), dtype=jnp.float32)
    v2 = jax.random.normal(k_v2, (B2, n_v2), dtype=jnp.float32)
    p_h2 = rbm_forward(v2, W2, b2, tk=512)
    jax.block_until_ready(p_h2)
    ref2 = jax.nn.sigmoid(
        jnp.dot(v2.astype(jnp.bfloat16), W2.astype(jnp.bfloat16),
                preferred_element_type=jnp.float32) + b2)
    assert jnp.allclose(p_h2, ref2, atol=1e-3, rtol=1e-3)

    print("KERNEL_OK")
</pallas_src>

<mosaic_0001>
module attributes {stable_mosaic.version = 11 : i64} {
  func.func @_rbm_fwd_kernel_single_k(%arg0: i32, %arg1: i32, %arg2: memref<128x128xbf16, #tpu.memory_space<vmem>>, %arg3: memref<128x128xbf16, #tpu.memory_space<vmem>>, %arg4: memref<1x128xf32, #tpu.memory_space<vmem>>, %arg5: memref<128x128xf32, #tpu.memory_space<vmem>>) attributes {dimension_semantics = [#tpu.dimension_semantics<parallel>, #tpu.dimension_semantics<parallel>], iteration_bounds = array<i64: 1, 1>, scalar_prefetch = 0 : i64, scratch_operands = 0 : i64, tpu.core_type = #tpu.core_type<tc>, window_params = [{transform_indices = @transform_0, window_bounds = array<i64: 128, 128>}, {transform_indices = @transform_1, window_bounds = array<i64: 128, 128>}, {transform_indices = @transform_2, window_bounds = array<i64: 1, 128>}, {transform_indices = @transform_3, window_bounds = array<i64: 128, 128>}]} {
    %c0 = arith.constant 0 : index
    %c0_0 = arith.constant 0 : index
    %0 = vector.load %arg2[%c0, %c0_0] : memref<128x128xbf16, #tpu.memory_space<vmem>>, vector<128x128xbf16>
    %c0_1 = arith.constant 0 : index
    %c0_2 = arith.constant 0 : index
    %1 = vector.load %arg3[%c0_1, %c0_2] : memref<128x128xbf16, #tpu.memory_space<vmem>>, vector<128x128xbf16>
    %cst = arith.constant dense<0.000000e+00> : vector<128x128xf32>
    %2 = tpu.matmul %0, %1, %cst {dimension_numbers = #tpu.dot_dimension_numbers<[1], [0], [0], [1], [0, 0, 1, 1], [], []>} : vector<128x128xbf16>, vector<128x128xbf16>, vector<128x128xf32> -> vector<128x128xf32>
    %c0_3 = arith.constant 0 : index
    %c0_4 = arith.constant 0 : index
    %3 = vector.load %arg4[%c0_3, %c0_4] : memref<1x128xf32, #tpu.memory_space<vmem>>, vector<1x128xf32>
    %4 = vector.broadcast %3 : vector<1x128xf32> to vector<128x128xf32>
    %5 = arith.addf %2, %4 : vector<128x128xf32>
    %6 = arith.negf %5 : vector<128x128xf32>
    %7 = math.exp %6 : vector<128x128xf32>
    %cst_5 = arith.constant 1.000000e+00 : f32
    %8 = vector.broadcast %cst_5 : f32 to vector<128x128xf32>
    %9 = arith.addf %8, %7 : vector<128x128xf32>
    %10 = arith.divf %8, %9 : vector<128x128xf32>
    %c0_6 = arith.constant 0 : index
    %c0_7 = arith.constant 0 : index
    %11 = vector.load %arg5[%c0_6, %c0_7] : memref<128x128xf32, #tpu.memory_space<vmem>>, vector<128x128xf32>
    tpu.vector_store %arg5[%c0_6, %c0_7], %10 {strides = array<i32>} : memref<128x128xf32, #tpu.memory_space<vmem>>, vector<128x128xf32>,
    return
  }
  func.func @transform_0(%arg0: i32, %arg1: i32) -> (i32, i32) {
    %c0_i32 = arith.constant 0 : i32
    %c0_i32_0 = arith.constant 0 : i32
    return %arg0, %c0_i32 : i32, i32
  }
  func.func @transform_1(%arg0: i32, %arg1: i32) -> (i32, i32) {
    %c0_i32 = arith.constant 0 : i32
    %c0_i32_0 = arith.constant 0 : i32
    return %c0_i32, %arg1 : i32, i32
  }
  func.func @transform_2(%arg0: i32, %arg1: i32) -> (i32, i32) {
    %c0_i32 = arith.constant 0 : i32
    %c0_i32_0 = arith.constant 0 : i32
    return %c0_i32, %arg1 : i32, i32
  }
  func.func @transform_3(%arg0: i32, %arg1: i32) -> (i32, i32) {
    %c0_i32 = arith.constant 0 : i32
    return %arg0, %arg1 : i32, i32
  }
}

</mosaic_0001>

<bundles_post_ra>
// kernel: rbm_forward.1
= control target key start
LH: loop header
LB: loop body
LE: loop exit
PB: predicated region body
PF: predicated region fallthrough
CT: control target
= control target key end

     0   :  { %s677_s1 = inlined_call_operand.vmem [shape: bf16[128,128], index: 1, kind: input, shape index: {}]   ;;  %s678_s0 = inlined_call_operand.vmem [shape: bf16[128,128], index: 0, kind: input, shape index: {}]   ;;  %s679_s2 = inlined_call_operand.vmem [shape: f32[1,128], index: 2, kind: input, shape index: {}]   ;;  %s680_s3 = inlined_call_operand.vmem [shape: f32[128,128], index: 3, kind: output, shape index: {}]  }
   0x1   :  { %v460_v0 = vld [vmem:[%s677_s1] sm:$0xff]   ;;  %v461_v1 = vld [vmem:[%s677_s1 + $0x8] sm:$0xff]   ;;  %v462_v2 = vld [vmem:[%s677_s1 + $0x10] sm:$0xff]  }
   0x2   :  { %412 = vmatprep.subr.bf16.mxu0 %v460_v0  ;;  %444 = vmatprep.subr.bf16.mxu1 %v460_v0  ;;  %v463_v3 = vld [vmem:[%s677_s1 + $0x18] sm:$0xff]   ;;  %v468_v4 = vld [vmem:[%s678_s0] sm:$0xff]   ;;  %v465_v7 = vld [vmem:[%s677_s1 + $0x28] sm:$0xff]  }
   0x3   :  { %413 = vmatpush3.bf16.msra.mxu0 %v460_v0  ;;  %452 = vmatpush3.bf16.msra.mxu1 %v460_v0  ;;  %v469_v5 = vld [vmem:[%s678_s0 + $0x20] sm:$0xff]   ;;  %v466_v8 = vld [vmem:[%s677_s1 + $0x30] sm:$0xff]   ;;  %v467_v9 = vld [vmem:[%s677_s1 + $0x38] sm:$0xff]  }
   0x4   :  { %414 = vmatprep.subr.bf16.mxu0 %v461_v1  ;;  %445 = vmatprep.subr.bf16.mxu1 %v461_v1  ;;  %v464_v6 = vld [vmem:[%s677_s1 + $0x20] sm:$0xff]   ;;  %v470_v10 = vld [vmem:[%s678_s0 + $0x8] sm:$0xff]   ;;  %v472_v12 = vld [vmem:[%s678_s0 + $0x10] sm:$0xff]  }
   0x5   :  { %428 = vmatprep.mubr.bf16.mxu0 %v468_v4  ;;  %436 = vmatprep.mubr.bf16.mxu1 %v469_v5  ;;  %v471_v11 = vld [vmem:[%s678_s0 + $0x28] sm:$0xff]   ;;  %v473_v13 = vld [vmem:[%s678_s0 + $0x30] sm:$0xff]   ;;  %v474_v14 = vld [vmem:[%s678_s0 + $0x18] sm:$0xff]  }
   0x6   :  { %v475_v15 = vld [vmem:[%s678_s0 + $0x38] sm:$0xff]   ;;  %v611_v16 = vld [vmem:[%s679_s2] ss:$0 sm:$0xff] }
   0x7   :  { %415 = vmatpush3.bf16.msra.mxu0 %v461_v1  ;;  %453 = vmatpush3.bf16.msra.mxu1 %v461_v1 }
   0x8   :  { %416 = vmatprep.subr.bf16.mxu0 %v462_v2  ;;  %446 = vmatprep.subr.bf16.mxu1 %v462_v2 }
   0xb   :  { %417 = vmatpush3.bf16.msra.mxu0 %v462_v2  ;;  %454 = vmatpush3.bf16.msra.mxu1 %v462_v2 }
   0xc   :  { %418 = vmatprep.subr.bf16.mxu0 %v463_v3  ;;  %447 = vmatprep.subr.bf16.mxu1 %v463_v3 }
   0xf   :  { %419 = vmatpush3.bf16.msra.mxu0 %v463_v3  ;;  %455 = vmatpush3.bf16.msra.mxu1 %v463_v3 }
  0x10   :  { %420 = vmatprep.subr.bf16.mxu0 %v464_v6  ;;  %448 = vmatprep.subr.bf16.mxu1 %v464_v6 }
  0x13   :  { %421 = vmatpush3.bf16.msra.mxu0 %v464_v6  ;;  %456 = vmatpush3.bf16.msra.mxu1 %v464_v6 }
  0x14   :  { %422 = vmatprep.subr.bf16.mxu0 %v465_v7  ;;  %449 = vmatprep.subr.bf16.mxu1 %v465_v7 }
  0x17   :  { %423 = vmatpush3.bf16.msra.mxu0 %v465_v7  ;;  %457 = vmatpush3.bf16.msra.mxu1 %v465_v7 }
  0x18   :  { %424 = vmatprep.subr.bf16.mxu0 %v466_v8  ;;  %450 = vmatprep.subr.bf16.mxu1 %v466_v8 }
  0x1b   :  { %425 = vmatpush3.bf16.msra.mxu0 %v466_v8  ;;  %458 = vmatpush3.bf16.msra.mxu1 %v466_v8 }
  0x1c   :  { %426 = vmatprep.subr.bf16.mxu0 %v467_v9  ;;  %451 = vmatprep.subr.bf16.mxu1 %v467_v9 }
  0x1f   :  { %427 = vmatpush3.bf16.msra.mxu0 %v467_v9  ;;  %459 = vmatpush3.bf16.msra.mxu1 %v467_v9 }
  0x22   :  { %429 = vmatmul.mubr.bf16.vlgmr.msra.gmra.mrb[0].mxu0 %v470_v10  ;;  %437 = vmatmul.mubr.bf16.vlgmr.msra.gmra.mrb[0].mxu1 %v471_v11 }
  0x23   :  { %432 = vmatprep.mubr.bf16.mxu0 %v472_v12  ;;  %440 = vmatprep.mubr.bf16.mxu1 %v473_v13 }
  0x2a   :  { %433 = vmatmul.mubr.bf16.gmra.mrb[4].mxu0 %v474_v14  ;;  %441 = vmatmul.mubr.bf16.gmra.mrb[4].mxu1 %v475_v15 }
  0xf5   :  { %v430_v17 = vpop.f32.mrb[0].mxu0  ;;  %v438_v18 = vpop.f32.mrb[0].mxu1 }
  0xf6   :  { %v193_v19 = vadd.f32 %v430_v17, %v611_v16  ;;  %v225_v20 = vadd.f32 %v438_v18, %v611_v16  ;;  %v184_v21 = vpop.f32.mrb[1].mxu0  ;;  %v216_v22 = vpop.f32.mrb[1].mxu1 }
  0xf7   :  { %v185_v23 = vadd.f32 %v611_v16, %v184_v21  ;;  %v217_v24 = vadd.f32 %v611_v16, %v216_v22  ;;  %v431_v25 = vpop.f32.mrb[2].mxu0  ;;  %v439_v26 = vpop.f32.mrb[2].mxu1 }
  0xf8   :  { %v382_v27 = vmul.f32 -1.442695, %v193_v19  ;;  %v390_v28 = vmul.f32 -1.442695, %v225_v20  ;;  %v196_v29 = vadd.f32 %v431_v25, %v611_v16  ;;  %v228_v30 = vadd.f32 %v439_v26, %v611_v16  ;;  %v187_v31 = vpop.f32.mrb[3].mxu0  ;;  %v219_v32 = vpop.f32.mrb[3].mxu1 }
  0xf9   :  { %v380_v33 = vmul.f32 -1.442695, %v185_v23  ;;  %v388_v34 = vmul.f32 -1.442695, %v217_v24  ;;  %v188_v35 = vadd.f32 %v611_v16, %v187_v31  ;;  %v220_v36 = vadd.f32 %v611_v16, %v219_v32 }
  0xfa   :  { %476 = vpow2.f32 %v382_v27  ;;  %v383_v37 = vmul.f32 -1.442695, %v196_v29  ;;  %v391_v38 = vmul.f32 -1.442695, %v228_v30 }
  0xfb   :  { %478 = vpow2.f32 %v390_v28  ;;  %v381_v39 = vmul.f32 -1.442695, %v188_v35  ;;  %v389_v40 = vmul.f32 -1.442695, %v220_v36 }
  0xfc   :  { %480 = vpow2.f32 %v380_v33 }
  0xfd   :  { %482 = vpow2.f32 %v388_v34  ;;  %v434_v41 = vpop.f32.mrb[4].mxu0  ;;  %v442_v42 = vpop.f32.mrb[4].mxu1 }
  0xfe   :  { %484 = vpow2.f32 %v383_v37  ;;  %v209_v43 = vadd.f32 %v434_v41, %v611_v16  ;;  %v241_v44 = vadd.f32 %v442_v42, %v611_v16  ;;  %v200_v45 = vpop.f32.mrb[5].mxu0  ;;  %v232_v46 = vpop.f32.mrb[5].mxu1 }
  0xff   :  { %486 = vpow2.f32 %v391_v38  ;;  %v201_v47 = vadd.f32 %v611_v16, %v200_v45  ;;  %v233_v48 = vadd.f32 %v611_v16, %v232_v46  ;;  %v435_v49 = vpop.f32.mrb[6].mxu0  ;;  %v443_v50 = vpop.f32.mrb[6].mxu1 }
 0x100   :  { %488 = vpow2.f32 %v381_v39  ;;  %v386_v51 = vmul.f32 -1.442695, %v209_v43  ;;  %v394_v52 = vmul.f32 -1.442695, %v241_v44  ;;  %v212_v53 = vadd.f32 %v435_v49, %v611_v16  ;;  %v203_v54 = vpop.f32.mrb[7].mxu0  ;;  %v235_v55 = vpop.f32.mrb[7].mxu1 }
 0x101   :  { %490 = vpow2.f32 %v389_v40  ;;  %v384_v56 = vmul.f32 -1.442695, %v201_v47  ;;  %v392_v57 = vmul.f32 -1.442695, %v233_v48  ;;  %v244_v12 = vadd.f32 %v443_v50, %v611_v16 }
 0x102   :  { %492 = vpow2.f32 %v386_v51  ;;  %v387_v58 = vmul.f32 -1.442695, %v212_v53  ;;  %v204_v15 = vadd.f32 %v611_v16, %v203_v54  ;;  %v236_v19 = vadd.f32 %v611_v16, %v235_v55 }
 0x103   :  { %494 = vpow2.f32 %v394_v52  ;;  %v395_v24 = vmul.f32 -1.442695, %v244_v12 }
 0x104   :  { %v477_v59 = vpop.eup %476  ;;  %496 = vpow2.f32 %v384_v56  ;;  %v385_v27 = vmul.f32 -1.442695, %v204_v15  ;;  %v393_v29 = vmul.f32 -1.442695, %v236_v19 }
 0x105   :  { %v479_v60 = vpop.eup %478  ;;  %v297_v61 = vadd.f32 1.0, %v477_v59  ;;  %498 = vpow2.f32 %v392_v57 }
 0x106   :  { %v481_v62 = vpop.eup %480  ;;  %v305_v63 = vadd.f32 1.0, %v479_v60  ;;  %500 = vpow2.f32 %v387_v58 }
 0x107   :  { %v483_v0 = vpop.eup %482  ;;  %502 = vrcp.f32 %v297_v61  ;;  %v295_v1 = vadd.f32 1.0, %v481_v62 }
 0x108   :  { %v485_v2 = vpop.eup %484  ;;  %504 = vrcp.f32 %v305_v63  ;;  %v303_v3 = vadd.f32 1.0, %v483_v0 }
 0x109   :  { %v487_v4 = vpop.eup %486  ;;  %506 = vrcp.f32 %v295_v1  ;;  %v298_v5 = vadd.f32 1.0, %v485_v2 }
 0x10a   :  { %v489_v6 = vpop.eup %488  ;;  %508 = vrcp.f32 %v303_v3  ;;  %v306_v7 = vadd.f32 1.0, %v487_v4 }
 0x10b   :  { %v491_v8 = vpop.eup %490  ;;  %510 = vrcp.f32 %v298_v5  ;;  %v296_v9 = vadd.f32 1.0, %v489_v6 }
 0x10c   :  { %v493_v10 = vpop.eup %492  ;;  %512 = vrcp.f32 %v306_v7  ;;  %v304_v11 = vadd.f32 1.0, %v491_v8 }
 0x10d   :  { %v495_v13 = vpop.eup %494  ;;  %514 = vrcp.f32 %v296_v9  ;;  %v301_v14 = vadd.f32 1.0, %v493_v10 }
 0x10e   :  { %v497_v17 = vpop.eup %496  ;;  %516 = vrcp.f32 %v304_v11  ;;  %v309_v18 = vadd.f32 1.0, %v495_v13 }
 0x10f   :  { %v499_v20 = vpop.eup %498  ;;  %518 = vrcp.f32 %v301_v14  ;;  %v299_v21 = vadd.f32 1.0, %v497_v17 }
 0x110   :  { %v501_v22 = vpop.eup %500  ;;  %520 = vrcp.f32 %v309_v18  ;;  %v307_v23 = vadd.f32 1.0, %v499_v20 }
 0x111   :  { %v503_v25 = vpop.eup %502  ;;  %522 = vrcp.f32 %v299_v21  ;;  %v302_v26 = vadd.f32 1.0, %v501_v22 }
 0x112   :  { %v505_v28 = vpop.eup %504  ;;  %345 = vst [vmem:[%s680_s3 + $0x10] sm:$0xff] %v503_v25  ;;  %524 = vrcp.f32 %v307_v23 }
 0x113   :  { %v507_v30 = vpop.eup %506  ;;  %353 = vst [vmem:[%s680_s3 + $0x50] sm:$0xff] %v505_v28  ;;  %526 = vrcp.f32 %v302_v26 }
 0x114   :  { %v509_v16 = vpop.eup %508  ;;  %343 = vst [vmem:[%s680_s3] sm:$0xff] %v507_v30  ;;  %528 = vpow2.f32 %v395_v24 }
 0x115   :  { %v511_v31 = vpop.eup %510  ;;  %351 = vst [vmem:[%s680_s3 + $0x40] sm:$0xff] %v509_v16  ;;  %530 = vpow2.f32 %v385_v27 }
 0x116   :  { %v513_v32 = vpop.eup %512  ;;  %346 = vst [vmem:[%s680_s3 + $0x18] sm:$0xff] %v511_v31  ;;  %532 = vpow2.f32 %v393_v29 }
 0x117   :  { %v515_v33 = vpop.eup %514  ;;  %354 = vst [vmem:[%s680_s3 + $0x58] sm:$0xff] %v513_v32 }
 0x118   :  { %v517_v34 = vpop.eup %516  ;;  %344 = vst [vmem:[%s680_s3 + $0x8] sm:$0xff] %v515_v33 }
 0x119   :  { %v519_v35 = vpop.eup %518  ;;  %352 = vst [vmem:[%s680_s3 + $0x48] sm:$0xff] %v517_v34 }
 0x11a   :  { %v521_v36 = vpop.eup %520  ;;  %349 = vst [vmem:[%s680_s3 + $0x30] sm:$0xff] %v519_v35 }
 0x11b   :  { %v523_v37 = vpop.eup %522  ;;  %357 = vst [vmem:[%s680_s3 + $0x70] sm:$0xff] %v521_v36 }
 0x11c   :  { %v525_v38 = vpop.eup %524  ;;  %347 = vst [vmem:[%s680_s3 + $0x20] sm:$0xff] %v523_v37 }
 0x11d   :  { %v527_v39 = vpop.eup %526  ;;  %355 = vst [vmem:[%s680_s3 + $0x60] sm:$0xff] %v525_v38 }
 0x11e   :  { %v529_v40 = vpop.eup %528  ;;  %350 = vst [vmem:[%s680_s3 + $0x38] sm:$0xff] %v527_v39 }
 0x11f   :  { %v531_v41 = vpop.eup %530  ;;  %v310_v42 = vadd.f32 1.0, %v529_v40 }
 0x120   :  { %v533_v43 = vpop.eup %532  ;;  %v300_v44 = vadd.f32 1.0, %v531_v41 }
 0x121   :  { %534 = vrcp.f32 %v310_v42  ;;  %v308_v45 = vadd.f32 1.0, %v533_v43 }
 0x122   :  { %536 = vrcp.f32 %v300_v44 }
 0x123   :  { %538 = vrcp.f32 %v308_v45 }
 0x12b   :  { %v535_v46 = vpop.eup %534 }
 0x12c   :  { %v537_v47 = vpop.eup %536  ;;  %358 = vst [vmem:[%s680_s3 + $0x78] sm:$0xff] %v535_v46 }
 0x12d   :  { %v539_v48 = vpop.eup %538  ;;  %348 = vst [vmem:[%s680_s3 + $0x28] sm:$0xff] %v537_v47 }
 0x12e   :  { %356 = vst [vmem:[%s680_s3 + $0x68] sm:$0xff] %v539_v48 }

</bundles_post_ra>
